<compile_context>
chip_gen: v7x
topology: tpu7x:2x2x1
jax: 0.10.0
libtpu: 0.0.40
codegen_flags: <defaults>
</compile_context>

<pallas_src>
import functools

import jax
import jax.numpy as jnp
from jax.experimental import pallas as pl
from jax.experimental.pallas import tpu as pltpu


def _round_up(x: int, m: int) -> int:
    return ((x + m - 1) // m) * m


# ---------------------------------------------------------------------------
# Kernel: whole 3-layer MLP for one (block_b, block_k) tile.
# Grid is (batch_tiles, k_tiles).  The K axis (innermost, "arbitrary") tiles
# the layer-1 contraction over in_features with an f32 VMEM accumulator;
# layers 2/3 and the store run only on the last K step.
# ---------------------------------------------------------------------------
def _mlp_kernel(x_ref, w1_ref, b1_ref, w2_ref, b2_ref, w3_ref, b3_ref,
                o_ref, acc_ref):
    k = pl.program_id(1)

    @pl.when(k == 0)
    def _init():
        acc_ref[...] = jnp.zeros_like(acc_ref)

    # Layer 1 partial matmul: bf16 operands, f32 accumulation on the MXU.
    acc_ref[...] += jnp.dot(x_ref[...].astype(jnp.bfloat16), w1_ref[...],
                            preferred_element_type=jnp.float32)

    @pl.when(k == pl.num_programs(1) - 1)
    def _finish():
        # Layer 1 epilogue: bias + ReLU, then downcast once (ReLU commutes
        # with the downcast for non-negative values) so only the bf16 copy of
        # h1 stays live.  Dropout(0.3) == identity in eval mode.
        # TODO(synk): training-mode dropout mask is not wired in (eval only).
        h1 = jnp.maximum(acc_ref[...] + b1_ref[...], 0.0).astype(jnp.bfloat16)

        # Layer 2: Linear + ReLU.
        h2 = jnp.dot(h1, w2_ref[...], preferred_element_type=jnp.float32)
        h2 = jnp.maximum(h2 + b2_ref[...], 0.0)

        # Layer 3 (H2 -> 1): VPU multiply + XLU lane reduce instead of an
        # N=1 MXU matmul.  w3_ref is a (1, H2p) f32 row; padded entries are 0.
        logit = jnp.sum(h2 * w3_ref[...], axis=-1, keepdims=True) + b3_ref[...]

        # Output block is (block_b, 1): exactly 4 B of HBM per logit (vs the
        # previous 128-lane broadcast at 512 B/logit).  The narrow masked
        # store is <1% of the tile's HBM traffic so it is not a bottleneck.
        # TODO(synk): if it ever shows up in profiles, lane-pack the column
        #             into a (block_b//128, 128) slab via an XLU transpose.
        o_ref[...] = logit.astype(o_ref.dtype)


# ---------------------------------------------------------------------------
# Static planning (plain Python ints only, usable as jit static args).
# ---------------------------------------------------------------------------
def _vmem_budget_bytes(block_b, block_k, n_k, Hp, H2p):
    """Rough VMEM footprint of one pipelined grid step (bytes)."""
    x_tile = 2 * block_b * block_k * 4                 # f32 x tile, double-buffered
    w1 = (2 if n_k > 1 else 1) * block_k * Hp * 2      # bf16; single-buf when resident
    w2 = Hp * H2p * 2                                  # bf16, single-buffered
    biases = (Hp + 2 * H2p + 1) * 4                    # f32, single-buffered
    acc = block_b * Hp * 4                             # layer-1 f32 accumulator
    inter = block_b * (Hp * 2 + H2p * 6)               # h1 bf16 + h2 f32/bf16 copies
    out = 2 * block_b * 4                              # (block_b, 1) f32, double-buffered
    return x_tile + w1 + w2 + biases + acc + inter + out


def _plan(B, F, H, H2, block_b=None, block_k=None):
    Hp = _round_up(max(H, 1), 128)
    H2p = _round_up(max(H2, 1), 128)

    try:
        phys_vmem = int(pltpu.get_tpu_info().vmem_capacity_bytes)
    except Exception:
        phys_vmem = 128 * 1024 * 1024
    small_vmem = phys_vmem < 96 * 1024 * 1024          # v7x-class TC (64 MiB)
    budget = int(phys_vmem * 0.6)                      # working-set target

    # --- batch tile ---
    if block_b is None:
        if B <= 8:
            block_b = 8
        else:
            target = 256 if small_vmem else 512        # 512+ on v5e/v6e, 256 on v7x
            block_b = min(target, _round_up(B, 128))
            # v7x megacore: keep >= 2 grid steps so both TCs get batch tiles.
            if small_vmem and B > 128 and (B + block_b - 1) // block_b < 2:
                block_b = max(128, _round_up((B + 1) // 2, 128))

    # --- feature (K) tiling for layer 1 ---
    if block_k is None:
        block_k = F if _vmem_budget_bytes(block_b, F, 1, Hp, H2p) <= budget else 512
    if block_k >= F:
        block_k, Fp, n_k = F, F, 1                     # weights fully resident
    else:
        block_k = _round_up(block_k, 128)
        Fp = _round_up(F, block_k)
        n_k = Fp // block_k

    # Last resort for very large hidden dims: shrink the batch tile.
    while (_vmem_budget_bytes(block_b, block_k, n_k, Hp, H2p) > budget
           and block_b > 128):
        block_b = max(128, block_b // 2)

    # Sized VMEM request: footprint + headroom, never the whole physical VMEM
    # (leave room for compiler-internal scratch; important on v7x's 64 MiB).
    footprint = _vmem_budget_bytes(block_b, block_k, n_k, Hp, H2p)
    vmem_limit = footprint * 3 // 2 + 4 * 1024 * 1024
    vmem_limit = max(32 * 1024 * 1024, min(vmem_limit, int(phys_vmem * 0.8)))

    return (int(block_b), int(block_k), int(n_k), int(Fp), int(Hp), int(H2p),
            int(vmem_limit))


# ---------------------------------------------------------------------------
# Forward pass.
# ---------------------------------------------------------------------------
@functools.partial(jax.jit, static_argnames=("plan",))
def _forward(x, w1, b1, w2, b2, w3, b3, *, plan):
    block_b, block_k, n_k, Fp, Hp, H2p, vmem_limit = plan
    B, F = x.shape
    H = w1.shape[1]
    H2 = w2.shape[1]

    # Weight prep: bf16 matmul weights, hidden dims zero-padded to 128 lanes
    # (exact: padded h1/h2 columns are ReLU(0)=0; padded w3 rows contribute 0).
    w1p = jnp.zeros((Fp, Hp), jnp.bfloat16).at[:F, :H].set(w1.astype(jnp.bfloat16))
    b1p = jnp.zeros((1, Hp), jnp.float32).at[:, :H].set(
        jnp.reshape(b1, (1, H)).astype(jnp.float32))
    w2p = jnp.zeros((Hp, H2p), jnp.bfloat16).at[:H, :H2].set(w2.astype(jnp.bfloat16))
    b2p = jnp.zeros((1, H2p), jnp.float32).at[:, :H2].set(
        jnp.reshape(b2, (1, H2)).astype(jnp.float32))
    w3p = jnp.zeros((1, H2p), jnp.float32).at[:, :H2].set(
        jnp.reshape(w3, (1, H2)).astype(jnp.float32))
    b3p = jnp.reshape(b3, (1, 1)).astype(jnp.float32)

    # Pad batch to the tile size and (when K-tiled) features to the K tile.
    Bp = _round_up(B, block_b)
    xp = x.astype(jnp.float32)
    if Bp != B or Fp != F:
        xp = jnp.pad(xp, ((0, Bp - B), (0, Fp - F)))

    grid = (Bp // block_b, n_k)
    resident = (n_k == 1)

    def _const_spec(shape):
        # Constant index_map -> single-buffer (no point double-buffering).
        return pl.BlockSpec(shape, lambda i, k: (0, 0),
                            pipeline_mode=pl.Buffered(1))

    if resident:
        w1_spec = pl.BlockSpec((block_k, Hp), lambda i, k: (0, 0),
                               pipeline_mode=pl.Buffered(1))
    else:
        w1_spec = pl.BlockSpec((block_k, Hp), lambda i, k: (k, 0))

    flops = 2 * Bp * (Fp * Hp + Hp * H2p + H2p)
    bytes_accessed = (Bp * Fp * 4 + Fp * Hp * 2 + Hp * H2p * 2
                      + (Hp + 2 * H2p + 1) * 4 + Bp * 4)

    out = pl.pallas_call(
        _mlp_kernel,
        out_shape=jax.ShapeDtypeStruct((Bp, 1), jnp.float32),
        grid_spec=pltpu.PrefetchScalarGridSpec(
            num_scalar_prefetch=0,
            grid=grid,
            in_specs=[
                pl.BlockSpec((block_b, block_k), lambda i, k: (i, k)),  # x tile
                w1_spec,                                                # W1 (bf16)
                _const_spec((1, Hp)),                                   # b1
                _const_spec((Hp, H2p)),                                  # W2 (bf16)
                _const_spec((1, H2p)),                                   # b2
                _const_spec((1, H2p)),                                   # w3 row
                _const_spec((1, 1)),                                     # b3
            ],
            out_specs=pl.BlockSpec((block_b, 1), lambda i, k: (i, 0)),
            scratch_shapes=[pltpu.VMEM((block_b, Hp), jnp.float32)],
        ),
        compiler_params=pltpu.CompilerParams(
            dimension_semantics=("parallel", "arbitrary"),
            vmem_limit_bytes=vmem_limit,
        ),
        cost_estimate=pl.CostEstimate(
            flops=flops, transcendentals=0, bytes_accessed=bytes_accessed),
    )(xp, w1p, b1p, w2p, b2p, w3p, b3p)

    return out[:B]


def domain_discriminator_forward(x, params, *, block_b=None, block_k=None):
    """x: (B, in_features) float32.  Returns (B, 1) float32 logits."""
    w1, b1, w2, b2, w3, b3 = params
    B, F = x.shape
    H = w1.shape[1]
    H2 = w2.shape[1]
    plan = _plan(B, F, H, H2, block_b, block_k)
    return _forward(x, w1, b1, w2, b2, w3, b3, plan=plan)


# ---------------------------------------------------------------------------
# Parameter init (kernel layout: (fan_in, fan_out) weights, 1-D biases) and a
# reference matching the kernel's bf16-matmul / f32-accumulate numerics.
# NOTE: results diverge from a pure-f32 PyTorch forward at bf16 tolerances.
# ---------------------------------------------------------------------------
def init_params(key, in_features, hidden_dim):
    h2 = hidden_dim // 2
    ks = jax.random.split(key, 6)

    def u(k, shape, fan_in):
        bound = float(fan_in) ** -0.5
        return jax.random.uniform(k, shape, jnp.float32, -bound, bound)

    w1 = u(ks[0], (in_features, hidden_dim), in_features)
    b1 = u(ks[1], (hidden_dim,), in_features)
    w2 = u(ks[2], (hidden_dim, h2), hidden_dim)
    b2 = u(ks[3], (h2,), hidden_dim)
    w3 = u(ks[4], (h2, 1), h2)
    b3 = u(ks[5], (1,), h2)
    return (w1, b1, w2, b2, w3, b3)


def reference_forward(x, params):
    w1, b1, w2, b2, w3, b3 = params
    h1 = jnp.maximum(jnp.dot(x.astype(jnp.bfloat16), w1.astype(jnp.bfloat16),
                             preferred_element_type=jnp.float32) + b1, 0.0)
    h2 = jnp.maximum(jnp.dot(h1.astype(jnp.bfloat16), w2.astype(jnp.bfloat16),
                             preferred_element_type=jnp.float32) + b2, 0.0)
    return jnp.dot(h2, w3.astype(jnp.float32)) + b3


if __name__ == "__main__":
    key = jax.random.PRNGKey(0)
    kx1, kp1, kx2, kp2, kx3, kp3 = jax.random.split(key, 6)

    # Case 1: tiny shapes consistent with the module (B, in_features).
    B1, F1, H1 = 2, 32, 32
    x1 = jax.random.normal(kx1, (B1, F1), jnp.float32)
    p1 = init_params(kp1, F1, H1)
    out1 = jax.block_until_ready(domain_discriminator_forward(x1, p1))
    ref1 = reference_forward(x1, p1)
    assert out1.shape == (B1, 1)
    assert jnp.allclose(out1, ref1, atol=1e-3, rtol=1e-3), "case 1 mismatch"

    # Case 2: non-128-aligned hidden dims + batch padding (padding path).
    B2, F2, HD2 = 260, 160, 192
    x2 = jax.random.normal(kx2, (B2, F2), jnp.float32)
    p2 = init_params(kp2, F2, HD2)
    out2 = jax.block_until_ready(domain_discriminator_forward(x2, p2))
    ref2 = reference_forward(x2, p2)
    assert out2.shape == (B2, 1)
    assert jnp.allclose(out2, ref2, atol=2e-2, rtol=2e-2), "case 2 mismatch"

    # Case 3: force the K-tiled layer-1 path (feature axis chunked).
    B3, F3, HD3 = 64, 320, 64
    x3 = jax.random.normal(kx3, (B3, F3), jnp.float32)
    p3 = init_params(kp3, F3, HD3)
    out3 = jax.block_until_ready(
        domain_discriminator_forward(x3, p3, block_k=128))
    ref3 = reference_forward(x3, p3)
    assert out3.shape == (B3, 1)
    assert jnp.allclose(out3, ref3, atol=2e-2, rtol=2e-2), "case 3 mismatch"

    print("KERNEL_OK")
</pallas_src>

<mosaic_0001>
module attributes {stable_mosaic.version = 11 : i64} {
  func.func @_mlp_kernel(%arg0: i32, %arg1: i32, %arg2: memref<8x32xf32, #tpu.memory_space<vmem>>, %arg3: memref<32x128xbf16, #tpu.memory_space<vmem>>, %arg4: memref<1x128xf32, #tpu.memory_space<vmem>>, %arg5: memref<128x128xbf16, #tpu.memory_space<vmem>>, %arg6: memref<1x128xf32, #tpu.memory_space<vmem>>, %arg7: memref<1x128xf32, #tpu.memory_space<vmem>>, %arg8: memref<1x1xf32, #tpu.memory_space<vmem>>, %arg9: memref<8x1xf32, #tpu.memory_space<vmem>>, %arg10: memref<8x128xf32, #tpu.memory_space<vmem>>) attributes {dimension_semantics = [#tpu.dimension_semantics<parallel>, #tpu.dimension_semantics<arbitrary>], iteration_bounds = array<i64: 1, 1>, scalar_prefetch = 0 : i64, scratch_operands = 1 : i64, tpu.core_type = #tpu.core_type<tc>, window_params = [{transform_indices = @transform_0, window_bounds = array<i64: 8, 32>}, {pipeline_mode = #tpu.pipeline_mode<synchronous>, transform_indices = @transform_1, window_bounds = array<i64: 32, 128>}, {pipeline_mode = #tpu.pipeline_mode<synchronous>, transform_indices = @transform_2, window_bounds = array<i64: 1, 128>}, {pipeline_mode = #tpu.pipeline_mode<synchronous>, transform_indices = @transform_3, window_bounds = array<i64: 128, 128>}, {pipeline_mode = #tpu.pipeline_mode<synchronous>, transform_indices = @transform_4, window_bounds = array<i64: 1, 128>}, {pipeline_mode = #tpu.pipeline_mode<synchronous>, transform_indices = @transform_5, window_bounds = array<i64: 1, 128>}, {pipeline_mode = #tpu.pipeline_mode<synchronous>, transform_indices = @transform_6, window_bounds = array<i64: 1, 1>}, {transform_indices = @transform_7, window_bounds = array<i64: 8, 1>}]} {
    %c0_i32 = arith.constant 0 : i32
    %0 = arith.cmpi eq, %arg1, %c0_i32 : i32
    %1 = arith.extui %0 : i1 to i32
    %c0_i32_0 = arith.constant 0 : i32
    %2 = arith.cmpi ne, %1, %c0_i32_0 : i32
    scf.if %2 {
      %cst_10 = arith.constant 0.000000e+00 : f32
      %13 = vector.broadcast %cst_10 : f32 to vector<8x128xf32>
      %c0_11 = arith.constant 0 : index
      %c0_12 = arith.constant 0 : index
      %14 = vector.load %arg10[%c0_11, %c0_12] : memref<8x128xf32, #tpu.memory_space<vmem>>, vector<8x128xf32>
      tpu.vector_store %arg10[%c0_11, %c0_12], %13 {strides = array<i32>} : memref<8x128xf32, #tpu.memory_space<vmem>>, vector<8x128xf32>,
    } else {
    }
    %c0 = arith.constant 0 : index
    %c0_1 = arith.constant 0 : index
    %3 = vector.load %arg10[%c0, %c0_1] : memref<8x128xf32, #tpu.memory_space<vmem>>, vector<8x128xf32>
    %c0_2 = arith.constant 0 : index
    %c0_3 = arith.constant 0 : index
    %4 = vector.load %arg2[%c0_2, %c0_3] : memref<8x32xf32, #tpu.memory_space<vmem>>, vector<8x32xf32>
    %5 = arith.truncf %4 : vector<8x32xf32> to vector<8x32xbf16>
    %c0_4 = arith.constant 0 : index
    %c0_5 = arith.constant 0 : index
    %6 = vector.load %arg3[%c0_4, %c0_5] : memref<32x128xbf16, #tpu.memory_space<vmem>>, vector<32x128xbf16>
    %cst = arith.constant dense<0.000000e+00> : vector<8x128xf32>
    %7 = tpu.matmul %5, %6, %cst {dimension_numbers = #tpu.dot_dimension_numbers<[1], [0], [0], [1], [0, 0, 1, 1], [], []>} : vector<8x32xbf16>, vector<32x128xbf16>, vector<8x128xf32> -> vector<8x128xf32>
    %8 = arith.addf %3, %7 : vector<8x128xf32>
    %c0_6 = arith.constant 0 : index
    %c0_7 = arith.constant 0 : index
    %9 = vector.load %arg10[%c0_6, %c0_7] : memref<8x128xf32, #tpu.memory_space<vmem>>, vector<8x128xf32>
    tpu.vector_store %arg10[%c0_6, %c0_7], %8 {strides = array<i32>} : memref<8x128xf32, #tpu.memory_space<vmem>>, vector<8x128xf32>,
    %c0_i32_8 = arith.constant 0 : i32
    %10 = arith.cmpi eq, %arg1, %c0_i32_8 : i32
    %11 = arith.extui %10 : i1 to i32
    %c0_i32_9 = arith.constant 0 : i32
    %12 = arith.cmpi ne, %11, %c0_i32_9 : i32
    scf.if %12 {
      %c0_10 = arith.constant 0 : index
      %c0_11 = arith.constant 0 : index
      %13 = vector.load %arg10[%c0_10, %c0_11] : memref<8x128xf32, #tpu.memory_space<vmem>>, vector<8x128xf32>
      %c0_12 = arith.constant 0 : index
      %c0_13 = arith.constant 0 : index
      %14 = vector.load %arg4[%c0_12, %c0_13] : memref<1x128xf32, #tpu.memory_space<vmem>>, vector<1x128xf32>
      %15 = vector.broadcast %14 : vector<1x128xf32> to vector<8x128xf32>
      %16 = arith.addf %13, %15 : vector<8x128xf32>
      %cst_14 = arith.constant 0.000000e+00 : f32
      %17 = vector.broadcast %cst_14 : f32 to vector<8x128xf32>
      %18 = arith.maximumf %16, %17 : vector<8x128xf32>
      %19 = arith.truncf %18 : vector<8x128xf32> to vector<8x128xbf16>
      %c0_15 = arith.constant 0 : index
      %c0_16 = arith.constant 0 : index
      %20 = vector.load %arg5[%c0_15, %c0_16] : memref<128x128xbf16, #tpu.memory_space<vmem>>, vector<128x128xbf16>
      %cst_17 = arith.constant dense<0.000000e+00> : vector<8x128xf32>
      %21 = tpu.matmul %19, %20, %cst_17 {dimension_numbers = #tpu.dot_dimension_numbers<[1], [0], [0], [1], [0, 0, 1, 1], [], []>} : vector<8x128xbf16>, vector<128x128xbf16>, vector<8x128xf32> -> vector<8x128xf32>
      %c0_18 = arith.constant 0 : index
      %c0_19 = arith.constant 0 : index
      %22 = vector.load %arg6[%c0_18, %c0_19] : memref<1x128xf32, #tpu.memory_space<vmem>>, vector<1x128xf32>
      %23 = vector.broadcast %22 : vector<1x128xf32> to vector<8x128xf32>
      %24 = arith.addf %21, %23 : vector<8x128xf32>
      %cst_20 = arith.constant 0.000000e+00 : f32
      %25 = vector.broadcast %cst_20 : f32 to vector<8x128xf32>
      %26 = arith.maximumf %24, %25 : vector<8x128xf32>
      %c0_21 = arith.constant 0 : index
      %c0_22 = arith.constant 0 : index
      %27 = vector.load %arg7[%c0_21, %c0_22] : memref<1x128xf32, #tpu.memory_space<vmem>>, vector<1x128xf32>
      %28 = vector.broadcast %27 : vector<1x128xf32> to vector<8x128xf32>
      %29 = arith.mulf %26, %28 : vector<8x128xf32>
      %cst_23 = arith.constant dense<0.000000e+00> : vector<8xf32>
      %30 = vector.multi_reduction <add>, %29, %cst_23 [1] : vector<8x128xf32> to vector<8xf32>
      %31 = vector.shape_cast %30 : vector<8xf32> to vector<8x1xf32>
      %c0_24 = arith.constant 0 : index
      %c0_25 = arith.constant 0 : index
      %32 = vector.load %arg8[%c0_24, %c0_25] : memref<1x1xf32, #tpu.memory_space<vmem>>, vector<1x1xf32>
      %33 = vector.broadcast %32 : vector<1x1xf32> to vector<8x1xf32>
      %34 = arith.addf %31, %33 : vector<8x1xf32>
      %c0_26 = arith.constant 0 : index
      %c0_27 = arith.constant 0 : index
      %35 = vector.load %arg9[%c0_26, %c0_27] : memref<8x1xf32, #tpu.memory_space<vmem>>, vector<8x1xf32>
      tpu.vector_store %arg9[%c0_26, %c0_27], %34 {strides = array<i32>} : memref<8x1xf32, #tpu.memory_space<vmem>>, vector<8x1xf32>,
    } else {
    }
    return
  }
  func.func @transform_0(%arg0: i32, %arg1: i32) -> (i32, i32) {
    %c0_i32 = arith.constant 0 : i32
    return %arg0, %arg1 : i32, i32
  }
  func.func @transform_1(%arg0: i32, %arg1: i32) -> (i32, i32) {
    %c0_i32 = arith.constant 0 : i32
    %c0_i32_0 = arith.constant 0 : i32
    %c0_i32_1 = arith.constant 0 : i32
    return %c0_i32, %c0_i32_0 : i32, i32
  }
  func.func @transform_2(%arg0: i32, %arg1: i32) -> (i32, i32) {
    %c0_i32 = arith.constant 0 : i32
    %c0_i32_0 = arith.constant 0 : i32
    %c0_i32_1 = arith.constant 0 : i32
    return %c0_i32, %c0_i32_0 : i32, i32
  }
  func.func @transform_3(%arg0: i32, %arg1: i32) -> (i32, i32) {
    %c0_i32 = arith.constant 0 : i32
    %c0_i32_0 = arith.constant 0 : i32
    %c0_i32_1 = arith.constant 0 : i32
    return %c0_i32, %c0_i32_0 : i32, i32
  }
  func.func @transform_4(%arg0: i32, %arg1: i32) -> (i32, i32) {
    %c0_i32 = arith.constant 0 : i32
    %c0_i32_0 = arith.constant 0 : i32
    %c0_i32_1 = arith.constant 0 : i32
    return %c0_i32, %c0_i32_0 : i32, i32
  }
  func.func @transform_5(%arg0: i32, %arg1: i32) -> (i32, i32) {
    %c0_i32 = arith.constant 0 : i32
    %c0_i32_0 = arith.constant 0 : i32
    %c0_i32_1 = arith.constant 0 : i32
    return %c0_i32, %c0_i32_0 : i32, i32
  }
  func.func @transform_6(%arg0: i32, %arg1: i32) -> (i32, i32) {
    %c0_i32 = arith.constant 0 : i32
    %c0_i32_0 = arith.constant 0 : i32
    %c0_i32_1 = arith.constant 0 : i32
    return %c0_i32, %c0_i32_0 : i32, i32
  }
  func.func @transform_7(%arg0: i32, %arg1: i32) -> (i32, i32) {
    %c0_i32 = arith.constant 0 : i32
    %c0_i32_0 = arith.constant 0 : i32
    return %arg0, %c0_i32 : i32, i32
  }
}

</mosaic_0001>

<bundles_post_ra>
// kernel: _forward.1
= control target key start
LH: loop header
LB: loop body
LE: loop exit
PB: predicated region body
PF: predicated region fallthrough
CT: control target
= control target key end

     0   :  { %v316_v0 = vmov 0.0   ;;  %vm317_vm0 = vmmov 0   ;;  %vm53_vm1 = vcmask 261120   ;;  %vm243_vm2 = vcmask 7168   ;;  %s406_s1 = inlined_call_operand.vmem [shape: bf16[32,128], index: 1, kind: input, shape index: {}]   ;;  %s407_s0 = inlined_call_operand.vmem [shape: f32[8,32], index: 0, kind: input, shape index: {}]   ;;  %s408_s3 = inlined_call_operand.vmem [shape: bf16[128,128], index: 3, kind: input, shape index: {}]   ;;  %s409_s2 = inlined_call_operand.vmem [shape: f32[1,128], index: 2, kind: input, shape index: {}]   ;;  %s410_s6 = inlined_call_operand.<no memory space> [shape: f32[1,1], index: 6, kind: input, shape index: {}]   ;;  %s411_s4 = inlined_call_operand.vmem [shape: f32[1,128], index: 4, kind: input, shape index: {}]   ;;  %s412_s5 = inlined_call_operand.vmem [shape: f32[1,128], index: 5, kind: input, shape index: {}]   ;;  %s413_s7 = inlined_call_operand.vmem [shape: f32[8,1], index: 7, kind: output, shape index: {}]  }
   0x1   :  { %276 = vmatprep.subr.bf16.mxu0 %v316_v0  ;;  %v306_v1 = vld [vmem:[%s406_s1] sm:$0xff]   ;;  %280 = vmatprep.mubr.msk.bf16.mxu0 %vm317_vm0, %v316_v0  ;;  %v307_v2 = vld [vmem:[%s406_s1 + $0x8] sm:$0xff]   ;;  %v310_v7 = vld [vmem:[%s408_s3 + $0x10] sm:$0xff]   ;;  %v12_v21 = vstv %s410_s6 }
   0x2   :  { %284 = vmatprep.subr.bf16.mxu1 %v316_v0  ;;  %300 = vmatprep.mubr.msk.bf16.mxu1 %vm317_vm0, %v316_v0  ;;  %v35_v3 = vld [vmem:[%s407_s0] sm:$0xff]  ;;  %v309_v6 = vld [vmem:[%s408_s3 + $0x8] sm:$0xff]   ;;  %v311_v8 = vld [vmem:[%s408_s3 + $0x18] sm:$0xff]   ;;  %13 = vst [vmem:[#allocation3] sm:$0x1] %v12_v21 }
   0x3   :  { %277 = vmatpush3.bf16.msra.mxu0 %v306_v1  ;;  %v308_v4 = vld [vmem:[%s408_s3] sm:$0xff]   ;;  %v36_v5 = vpack.c.bf16 %v35_v3, %v35_v3  ;;  %v313_v10 = vld [vmem:[%s408_s3 + $0x28] sm:$0xff]   ;;  %v314_v11 = vld [vmem:[%s408_s3 + $0x30] sm:$0xff]  }
   0x4   :  { %278 = vmatprep.subr.bf16.mxu0 %v316_v0  ;;  %285 = vmatpush3.bf16.msra.mxu1 %v308_v4  ;;  %v312_v9 = vld [vmem:[%s408_s3 + $0x20] sm:$0xff]   ;;  %v315_v12 = vld [vmem:[%s408_s3 + $0x38] sm:$0xff]  }
   0x5   :  { %286 = vmatprep.subr.bf16.mxu1 %v316_v0  ;;  %v252_v13 = vld [vmem:[%s409_s2] ss:$0 sm:$0xff] }
   0x6   :  { %v253_v22 = vld [vmem:[%s411_s4] ss:$0 sm:$0xff] }
   0x7   :  { %279 = vmatpush3.bf16.msra.mxu0 %v307_v2  ;;  %v262_v27 = vld [vmem:[%s412_s5] ss:$0 sm:$0xff] }
   0x8   :  { %287 = vmatpush3.bf16.msra.mxu1 %v309_v6 }
   0x9   :  { %288 = vmatprep.subr.bf16.mxu1 %v316_v0  ;;  %v263_v31 = vld [vmem:[#allocation3] ss:$0 sm:$0xff] }
   0xa   :  { %281 = vmatmul.mubr.msk.bf16.vlgmr.msra.gmra.mrb[0].mxu0 %vm53_vm1, %v36_v5 }
   0xc   :  { %289 = vmatpush3.bf16.msra.mxu1 %v310_v7 }
   0xd   :  { %290 = vmatprep.subr.bf16.mxu1 %v316_v0 }
  0x10   :  { %291 = vmatpush3.bf16.msra.mxu1 %v311_v8 }
  0x11   :  { %292 = vmatprep.subr.bf16.mxu1 %v316_v0 }
  0x14   :  { %293 = vmatpush3.bf16.msra.mxu1 %v312_v9 }
  0x15   :  { %294 = vmatprep.subr.bf16.mxu1 %v316_v0 }
  0x18   :  { %295 = vmatpush3.bf16.msra.mxu1 %v313_v10 }
  0x19   :  { %296 = vmatprep.subr.bf16.mxu1 %v316_v0 }
  0x1c   :  { %297 = vmatpush3.bf16.msra.mxu1 %v314_v11 }
  0x1d   :  { %298 = vmatprep.subr.bf16.mxu1 %v316_v0 }
  0x20   :  { %299 = vmatpush3.bf16.msra.mxu1 %v315_v12 }
  0xdd   :  { %v91_v14 = vpop.f32.mrb[0].mxu0 }
  0xde   :  { %v110_v15 = vadd.f32 %v252_v13, %v91_v14  ;;  %v282_v16 = vpop.f32.mrb[1].mxu0 }
  0xdf   :  { %v94_v17 = vpop.f32.mrb[2].mxu0 }
  0xe0   :  { %v111_v18 = vmax.f32 %v110_v15, 0.0  ;;  %v283_v19 = vpop.f32.mrb[3].mxu0 }
  0xe2   :  { %v112_v20 = vpack.c.bf16 %v111_v18, %v111_v18 }
  0xe4   :  { %301 = vmatmul.mubr.bf16.vlgmr.msra.gmra.mrb[0].mxu1 %v112_v20 }
 0x1b7   :  { %v218_v23 = vpop.f32.mrb[0].mxu1 }
 0x1b8   :  { %v219_v24 = vadd.f32 %v253_v22, %v218_v23  ;;  %v302_v25 = vpop.f32.mrb[1].mxu1 }
 0x1b9   :  { %v221_v26 = vpop.f32.mrb[2].mxu1 }
 0x1ba   :  { %v224_v28 = vmax.f32 %v219_v24, 0.0  ;;  %v303_v29 = vpop.f32.mrb[3].mxu1 }
 0x1bc   :  { %v232_v30 = vmul.f32 %v262_v27, %v224_v28 }
 0x1be   :  { %233 = vadd.xlane.f32.xlu0 %v232_v30 }
 0x24b   :  { %v234_v32 = vpop.xlane.xlu0 %233 }
 0x24c   :  { %v242_v33 = vadd.f32 %v263_v31, %v234_v32 }
 0x24e   :  { %244 = vst.msk [vmem:[%s413_s7] sm:$0xff] %vm243_vm2, %v242_v33 }

</bundles_post_ra>
